<compile_context>
chip_gen: v6e
topology: v6e:2x2x1
jax: 0.10.0
libtpu: 0.0.40
codegen_flags: <defaults>
</compile_context>

<pallas_src>
import functools

import numpy as np
import jax
import jax.numpy as jnp
from jax.experimental import pallas as pl
from jax.experimental.pallas import tpu as pltpu


def _round_up(x, m):
    return ((x + m - 1) // m) * m


def _cdiv(a, b):
    return (a + b - 1) // b


# ----------------------------------------------------------------------------
# In-kernel helpers (traced inside the Pallas kernel body)
# ----------------------------------------------------------------------------
def _pairwise_l1(boxes_a, boxes_b_T):
    """L1 cdist. boxes_a: (N, 4) cxcywh, boxes_b_T: (4, T) cxcywh -> (N, T)."""
    d = jnp.abs(boxes_a[:, 0:1] - boxes_b_T[0:1, :])
    for k in range(1, 4):
        d = d + jnp.abs(boxes_a[:, k:k + 1] - boxes_b_T[k:k + 1, :])
    return d


def _pairwise_giou(boxes_a, boxes_b_T):
    """Generalized IoU. boxes_a: (N, 4) cxcywh, boxes_b_T: (4, T) cxcywh -> (N, T).

    Uses approximate EUP reciprocals (error ~2^-12) instead of exact divides:
        giou - (earea - union)/earea == inter/union + union/earea - 1
    """
    cxa, cya, wa, ha = (boxes_a[:, 0:1], boxes_a[:, 1:2],
                        boxes_a[:, 2:3], boxes_a[:, 3:4])          # (N, 1)
    cxb, cyb, wb, hb = (boxes_b_T[0:1, :], boxes_b_T[1:2, :],
                        boxes_b_T[2:3, :], boxes_b_T[3:4, :])       # (1, T)
    # cxcywh -> xyxy
    x1a, y1a, x2a, y2a = cxa - 0.5 * wa, cya - 0.5 * ha, cxa + 0.5 * wa, cya + 0.5 * ha
    x1b, y1b, x2b, y2b = cxb - 0.5 * wb, cyb - 0.5 * hb, cxb + 0.5 * wb, cyb + 0.5 * hb

    area_a = (x2a - x1a) * (y2a - y1a)                              # (N, 1)
    area_b = (x2b - x1b) * (y2b - y1b)                              # (1, T)

    iw = jnp.maximum(jnp.minimum(x2a, x2b) - jnp.maximum(x1a, x1b), 0.0)
    ih = jnp.maximum(jnp.minimum(y2a, y2b) - jnp.maximum(y1a, y1b), 0.0)
    inter = iw * ih                                                 # (N, T)
    union = area_a + area_b - inter                                 # (N, T)

    # Enclosing-box extents: no clamp needed when box w,h >= 0 (provably nonnegative),
    # which saves 4 VALU max ops per element across the two giou calls.
    ew = jnp.maximum(x2a, x2b) - jnp.minimum(x1a, x1b)
    eh = jnp.maximum(y2a, y2b) - jnp.minimum(y1a, y1b)
    earea = ew * eh                                                 # (N, T)

    return (inter * pl.reciprocal(union, approx=True)
            + union * pl.reciprocal(earea, approx=True) - 1.0)


# ----------------------------------------------------------------------------
# Pallas kernel: one (TILE_N, TILE_T) tile of the HOI matching cost matrix
# ----------------------------------------------------------------------------
def _hoi_cost_kernel(obj_logits_ref, verb_logits_ref, pred_boxes_ref,
                     obj_onehot_T_ref, verb_labels_T_ref, tgt_boxes_T_ref,
                     col_consts_ref, out_ref, *, w_obj, w_verb, w_bbox, w_giou):
    # Hoisted, grid-invariant per-column constants (computed once in the wrapper):
    #   row 0: 1/(sum_v(l) + 1e-4)      row 1: 1/((V - sum_v(l)) + 1e-4)
    #   row 2: V - sum_v(l)             row 3: (tgt_obj_boxes != 0).any()
    #   row 4: (tgt_obj_boxes == 0).all()
    col = col_consts_ref[...]                                               # (8, T)
    inv_pos_den = col[0:1, :]
    inv_neg_den = col[1:2, :]
    neg_base = col[2:3, :]
    obj_nonzero = col[3:4, :]
    obj_allzero = col[4:5, :]

    # --- object-class cost: -softmax(logits)[:, tgt_obj_labels] ---------------------
    # one-hot matmul on the MXU; softmax normalizer folded in as an (N,1) reciprocal
    # multiply so the full (N, C) probability matrix is never materialized.
    logits = obj_logits_ref[...]
    z = logits - jnp.max(logits, axis=-1, keepdims=True)
    e = jnp.exp(z)                                                          # (N, C)
    inv_denom = 1.0 / jnp.sum(e, axis=-1, keepdims=True)                    # (N, 1)
    numer = jnp.dot(e, obj_onehot_T_ref[...],
                    preferred_element_type=jnp.float32)                     # (N, T)
    total = (-w_obj) * (numer * inv_denom)

    # --- verb-class cost (single MXU matmul; 'neg' derived algebraically) -----------
    verb_prob = 1.0 / (1.0 + jnp.exp(-verb_logits_ref[...]))                # (N, V)
    pos = jnp.dot(verb_prob, verb_labels_T_ref[...],
                  preferred_element_type=jnp.float32)                       # (N, T)
    p_sum = jnp.sum(verb_prob, axis=-1, keepdims=True)                      # (N, 1)
    # (1 - p) @ (1 - l) == V - sum(l) - sum(p) + p @ l
    neg = neg_base - p_sum + pos                                            # (N, T)
    total = total + (-0.5 * w_verb) * (pos * inv_pos_den + neg * inv_neg_den)

    # --- box costs -------------------------------------------------------------------
    pbox = pred_boxes_ref[...]                                              # (N, 8)
    sub = pbox[:, 0:4]
    obj = pbox[:, 4:8]
    tbox = tgt_boxes_T_ref[...]                                             # (8, T)
    tsub_t = tbox[0:4, :]
    tobj_t = tbox[4:8, :]

    cost_sub_bbox = _pairwise_l1(sub, tsub_t)                               # (N, T)
    cost_obj_bbox = _pairwise_l1(obj, tobj_t) * obj_nonzero                 # (N, T)
    total = total + w_bbox * jnp.maximum(cost_sub_bbox, cost_obj_bbox)

    cost_sub_giou = -_pairwise_giou(sub, tsub_t)                            # (N, T)
    cost_obj_giou = -_pairwise_giou(obj, tobj_t) + cost_sub_giou * obj_allzero
    total = total + w_giou * jnp.maximum(cost_sub_giou, cost_obj_giou)

    out_ref[...] = total


# ----------------------------------------------------------------------------
# Host-side Hungarian algorithm (shortest-augmenting-path, e-maxx formulation)
# ----------------------------------------------------------------------------
# TODO(synk): linear_sum_assignment is an inherently sequential, data-dependent host
# algorithm with no clean Pallas equivalent; it runs in NumPy on the kernel's output.
def _hungarian_rows_le_cols(cost):
    """cost: (n, m) with n <= m. Returns (row_ind, col_ind) matching every row."""
    cost = np.asarray(cost, dtype=np.float64)
    n, m = cost.shape
    INF = 1e18
    u = np.zeros(n + 1)
    v = np.zeros(m + 1)
    p = np.zeros(m + 1, dtype=np.int64)     # p[j] = row (1-based) matched to column j
    way = np.zeros(m + 1, dtype=np.int64)
    for i in range(1, n + 1):
        p[0] = i
        j0 = 0
        minv = np.full(m + 1, INF)
        used = np.zeros(m + 1, dtype=bool)
        while True:
            used[j0] = True
            i0 = p[j0]
            delta = INF
            j1 = -1
            for j in range(1, m + 1):
                if not used[j]:
                    cur = cost[i0 - 1, j - 1] - u[i0] - v[j]
                    if cur < minv[j]:
                        minv[j] = cur
                        way[j] = j0
                    if minv[j] < delta:
                        delta = minv[j]
                        j1 = j
            for j in range(m + 1):
                if used[j]:
                    u[p[j]] += delta
                    v[j] -= delta
                else:
                    minv[j] -= delta
            j0 = j1
            if p[j0] == 0:
                break
        while True:
            j1 = way[j0]
            p[j0] = p[j1]
            j0 = j1
            if j0 == 0:
                break
    rows, cols = [], []
    for j in range(1, m + 1):
        if p[j] > 0:
            rows.append(p[j] - 1)
            cols.append(j - 1)
    return np.asarray(rows, np.int64), np.asarray(cols, np.int64)


def _linear_sum_assignment(cost):
    cost = np.asarray(cost, dtype=np.float64)
    n, m = cost.shape
    if n == 0 or m == 0:
        return np.zeros(0, np.int64), np.zeros(0, np.int64)
    if n <= m:
        r, c = _hungarian_rows_le_cols(cost)
    else:
        c, r = _hungarian_rows_le_cols(cost.T)
    order = np.argsort(r)
    return r[order], c[order]


# ----------------------------------------------------------------------------
# Module wrapper
# ----------------------------------------------------------------------------
class HungarianMatcherHOI:
    def __init__(self, cost_obj_class=1.0, cost_verb_class=1.0, cost_bbox=1.0,
                 cost_giou=1.0, cost_matching=1.0):
        assert (cost_obj_class != 0 or cost_verb_class != 0 or cost_bbox != 0
                or cost_giou != 0 or cost_matching != 0), 'all costs cant be 0'
        self.cost_obj_class = float(cost_obj_class)
        self.cost_verb_class = float(cost_verb_class)
        self.cost_bbox = float(cost_bbox)
        self.cost_giou = float(cost_giou)
        self.cost_matching = float(cost_matching)   # unused in forward (matches reference)

    # ------------------------------------------------------------------ kernel launch
    def _padded_cost(self, outputs, targets):
        """Returns (padded cost matrix (n_rows_pad, t_pad) on device, n_rows, t_total)."""
        bs, nq = outputs['pred_obj_logits'].shape[:2]
        obj_logits = outputs['pred_obj_logits'].reshape(bs * nq, -1).astype(jnp.float32)
        verb_logits = outputs['pred_verb_logits'].reshape(bs * nq, -1).astype(jnp.float32)
        sub_boxes = outputs['pred_sub_boxes'].reshape(bs * nq, 4).astype(jnp.float32)
        obj_boxes = outputs['pred_obj_boxes'].reshape(bs * nq, 4).astype(jnp.float32)
        pred_boxes = jnp.concatenate([sub_boxes, obj_boxes], axis=-1)       # (N, 8)

        tgt_obj_labels = jnp.concatenate([v['obj_labels'] for v in targets])
        tgt_verb_labels = jnp.concatenate([v['verb_labels'] for v in targets]).astype(jnp.float32)
        tgt_sub_boxes = jnp.concatenate([v['sub_boxes'] for v in targets]).astype(jnp.float32)
        tgt_obj_boxes = jnp.concatenate([v['obj_boxes'] for v in targets]).astype(jnp.float32)

        t_total = int(tgt_obj_labels.shape[0])
        assert t_total > 0
        num_c = int(obj_logits.shape[-1])
        num_v = int(verb_logits.shape[-1])
        n_rows = bs * nq

        # ---------------- tiling -----------------------------------------------------
        # Target/lane axis: multiple of 128 (lane-dense stores); tile at <=512 so the
        # ~10 live (tile_n, tile_t) f32 temporaries stay well inside v7x's 64 MiB VMEM
        # (and v5e's 16 MiB scoped default).
        t_pad = _round_up(t_total, 128)
        if t_pad <= 512:
            tile_t = t_pad
        else:
            tile_t = 512
            t_pad = _round_up(t_total, tile_t)
        n_t_tiles = t_pad // tile_t

        # Row/prediction axis: pick the tile so the parallel row grid has >=2 steps
        # whenever possible (both v7x TensorCores get work), capped at 256 rows.
        n_rows_r8 = _round_up(n_rows, 8)
        tile_n = min(256, _round_up(_cdiv(n_rows_r8, 2), 8))
        n_rows_pad = _round_up(n_rows, tile_n)
        grid = (n_rows_pad // tile_n, n_t_tiles)

        def pad_rows(x):
            return jnp.pad(x, ((0, n_rows_pad - n_rows), (0, 0)))

        def pad_cols(x):
            return jnp.pad(x, ((0, 0), (0, t_pad - t_total)))

        obj_logits_p = pad_rows(obj_logits)
        verb_logits_p = pad_rows(verb_logits)
        pred_boxes_p = pad_rows(pred_boxes)

        # One-hot built directly in (C, T) orientation (no transpose of a one_hot array).
        obj_onehot_T = (jnp.arange(num_c, dtype=jnp.int32)[:, None]
                        == tgt_obj_labels[None, :].astype(jnp.int32)).astype(jnp.float32)
        obj_onehot_T = pad_cols(obj_onehot_T)                               # (C, T_pad)
        verb_labels_T = pad_cols(tgt_verb_labels.T)                         # (V, T_pad)
        tgt_boxes_T = pad_cols(
            jnp.concatenate([tgt_sub_boxes, tgt_obj_boxes], axis=-1).T)     # (8, T_pad)

        # Hoisted grid-invariant per-column constants, packed into one (8, T_pad) block.
        l_sum = jnp.sum(tgt_verb_labels, axis=-1)                           # (T,)
        neg_base = float(num_v) - l_sum
        inv_pos_den = 1.0 / (l_sum + 1e-4)
        inv_neg_den = 1.0 / (neg_base + 1e-4)
        obj_nonzero = jnp.any(tgt_obj_boxes != 0, axis=1).astype(jnp.float32)
        obj_allzero = 1.0 - obj_nonzero
        col_consts = jnp.stack(
            [inv_pos_den, inv_neg_den, neg_base, obj_nonzero, obj_allzero], axis=0)
        col_consts = jnp.pad(col_consts, ((0, 3), (0, t_pad - t_total)))    # (8, T_pad)

        # Target-side blocks: if there is only one T tile their index_map is constant,
        # so single-buffer them (double-buffering would just waste VMEM).
        if n_t_tiles == 1:
            def tgt_spec(rows):
                return pl.BlockSpec((rows, tile_t), lambda i, j: (0, j),
                                    pipeline_mode=pl.Buffered(1))
        else:
            def tgt_spec(rows):
                return pl.BlockSpec((rows, tile_t), lambda i, j: (0, j))

        kernel = functools.partial(
            _hoi_cost_kernel,
            w_obj=self.cost_obj_class, w_verb=self.cost_verb_class,
            w_bbox=self.cost_bbox, w_giou=self.cost_giou)

        # Advisory cost estimate so XLA schedules the custom call sensibly.
        flops = 2 * n_rows_pad * (num_c + num_v) * t_pad + 60 * n_rows_pad * t_pad
        transcendentals = n_rows_pad * (num_c + num_v) + 4 * n_rows_pad * t_pad
        bytes_accessed = 4 * (n_rows_pad * (num_c + num_v + 8)
                              + (num_c + num_v + 16) * t_pad
                              + n_rows_pad * t_pad)

        c_padded = pl.pallas_call(
            kernel,
            out_shape=jax.ShapeDtypeStruct((n_rows_pad, t_pad), jnp.float32),
            grid_spec=pltpu.PrefetchScalarGridSpec(
                num_scalar_prefetch=0,
                grid=grid,
                in_specs=[
                    # prediction-side tiles, indexed by the row-grid axis
                    pl.BlockSpec((tile_n, num_c), lambda i, j: (i, 0)),
                    pl.BlockSpec((tile_n, num_v), lambda i, j: (i, 0)),
                    pl.BlockSpec((tile_n, 8), lambda i, j: (i, 0)),
                    # target-side blocks, indexed by the T-grid axis
                    tgt_spec(num_c),
                    tgt_spec(num_v),
                    tgt_spec(8),
                    tgt_spec(8),
                ],
                out_specs=pl.BlockSpec((tile_n, tile_t), lambda i, j: (i, j)),
            ),
            compiler_params=pltpu.CompilerParams(
                dimension_semantics=("parallel", "parallel"),
                vmem_limit_bytes=32 * 1024 * 1024),
            cost_estimate=pl.CostEstimate(
                flops=flops, transcendentals=transcendentals,
                bytes_accessed=bytes_accessed),
        )(obj_logits_p, verb_logits_p, pred_boxes_p,
          obj_onehot_T, verb_labels_T, tgt_boxes_T, col_consts)

        return c_padded, n_rows, t_total

    # ------------------------------------------------------------------ public helpers
    def cost_matrix(self, outputs, targets):
        """Cost matrix (bs, num_queries, total_targets) as a JAX array (for testing)."""
        bs, nq = outputs['pred_obj_logits'].shape[:2]
        t_total = sum(int(v['obj_labels'].shape[0]) for v in targets)
        if t_total == 0:
            return jnp.zeros((bs, nq, 0), jnp.float32)
        c_padded, n_rows, t_tot = self._padded_cost(outputs, targets)
        return c_padded[:n_rows, :t_tot].reshape(bs, nq, t_tot)

    def assign(self, cost_np, targets):
        cost_np = np.asarray(cost_np)
        bs = cost_np.shape[0]
        sizes = [int(v['obj_labels'].shape[0]) for v in targets]
        indices, offset = [], 0
        for b in range(bs):
            c = cost_np[b, :, offset:offset + sizes[b]]
            i, j = _linear_sum_assignment(c)
            indices.append((i.astype(np.int64), j.astype(np.int64)))
            offset += sizes[b]
        return indices

    def __call__(self, outputs, targets):
        bs, nq = outputs['pred_obj_logits'].shape[:2]
        t_total = sum(int(v['obj_labels'].shape[0]) for v in targets)
        if t_total == 0:
            empty = np.zeros(0, np.int64)
            return [(empty, empty) for _ in range(bs)]
        c_padded, n_rows, t_tot = self._padded_cost(outputs, targets)
        c_np = np.asarray(jax.block_until_ready(c_padded))
        # Un-pad on the host: avoids materializing a second full copy of the cost
        # matrix in HBM right before the device->host transfer.
        c_np = c_np[:n_rows, :t_tot].reshape(bs, nq, t_tot)
        return self.assign(c_np, targets)


# ----------------------------------------------------------------------------
# Pure-JAX reference (for correctness checking in the demo)
# ----------------------------------------------------------------------------
def _reference_cost(outputs, targets, w_obj, w_verb, w_bbox, w_giou):
    bs, nq = outputs['pred_obj_logits'].shape[:2]
    obj_prob = jax.nn.softmax(outputs['pred_obj_logits'].reshape(bs * nq, -1), axis=-1)
    verb_prob = jax.nn.sigmoid(outputs['pred_verb_logits'].reshape(bs * nq, -1))
    sub = outputs['pred_sub_boxes'].reshape(bs * nq, 4)
    obj = outputs['pred_obj_boxes'].reshape(bs * nq, 4)

    tl = jnp.concatenate([v['obj_labels'] for v in targets])
    vl = jnp.concatenate([v['verb_labels'] for v in targets]).astype(jnp.float32)
    tsb = jnp.concatenate([v['sub_boxes'] for v in targets]).astype(jnp.float32)
    tob = jnp.concatenate([v['obj_boxes'] for v in targets]).astype(jnp.float32)

    c_obj = -obj_prob[:, tl]
    vlt = vl.T
    c_verb = -(verb_prob @ vlt / (vlt.sum(0, keepdims=True) + 1e-4)
               + (1 - verb_prob) @ (1 - vlt) / ((1 - vlt).sum(0, keepdims=True) + 1e-4)) / 2

    def l1(a, b):
        return jnp.abs(a[:, None, :] - b[None, :, :]).sum(-1)

    def to_xyxy(b):
        cx, cy, w, h = b[..., 0], b[..., 1], b[..., 2], b[..., 3]
        return jnp.stack([cx - 0.5 * w, cy - 0.5 * h, cx + 0.5 * w, cy + 0.5 * h], -1)

    def giou(a, b):
        a, b = to_xyxy(a), to_xyxy(b)
        area_a = (a[:, 2] - a[:, 0]) * (a[:, 3] - a[:, 1])
        area_b = (b[:, 2] - b[:, 0]) * (b[:, 3] - b[:, 1])
        lt = jnp.maximum(a[:, None, :2], b[None, :, :2])
        rb = jnp.minimum(a[:, None, 2:], b[None, :, 2:])
        wh = jnp.clip(rb - lt, 0.0)
        inter = wh[..., 0] * wh[..., 1]
        union = area_a[:, None] + area_b[None, :] - inter
        iou = inter / union
        lt2 = jnp.minimum(a[:, None, :2], b[None, :, :2])
        rb2 = jnp.maximum(a[:, None, 2:], b[None, :, 2:])
        wh2 = jnp.clip(rb2 - lt2, 0.0)
        earea = wh2[..., 0] * wh2[..., 1]
        return iou - (earea - union) / earea

    c_sub_bbox = l1(sub, tsb)
    c_obj_bbox = l1(obj, tob) * jnp.any(tob != 0, axis=1)[None, :]
    c_bbox = jnp.maximum(c_sub_bbox, c_obj_bbox)
    c_sub_giou = -giou(sub, tsb)
    c_obj_giou = -giou(obj, tob) + c_sub_giou * jnp.all(tob == 0, axis=1)[None, :]
    c_giou = jnp.maximum(c_sub_giou, c_obj_giou)

    C = w_obj * c_obj + w_verb * c_verb + w_bbox * c_bbox + w_giou * c_giou
    return C.reshape(bs, nq, -1)


# ----------------------------------------------------------------------------
# Demo
# ----------------------------------------------------------------------------
def _rand_boxes(key, shape_prefix):
    kc, ks = jax.random.split(key)
    centers = jax.random.uniform(kc, shape_prefix + (2,), minval=0.2, maxval=0.8)
    sizes = jax.random.uniform(ks, shape_prefix + (2,), minval=0.05, maxval=0.3)
    return jnp.concatenate([centers, sizes], axis=-1).astype(jnp.float32)


if __name__ == "__main__":
    key = jax.random.PRNGKey(0)
    bs, num_queries = 2, 8
    num_obj_classes, num_verb_classes = 12, 10
    keys = jax.random.split(key, 8)

    outputs = {
        'pred_obj_logits': jax.random.normal(keys[0], (bs, num_queries, num_obj_classes), jnp.float32),
        'pred_verb_logits': jax.random.normal(keys[1], (bs, num_queries, num_verb_classes), jnp.float32),
        'pred_sub_boxes': _rand_boxes(keys[2], (bs, num_queries)),
        'pred_obj_boxes': _rand_boxes(keys[3], (bs, num_queries)),
    }

    sizes = [3, 2]
    targets = []
    for b in range(bs):
        n = sizes[b]
        kk = jax.random.split(keys[4 + b], 4)
        obj_boxes = _rand_boxes(kk[3], (n,))
        if b == 1:
            obj_boxes = obj_boxes.at[0].set(0.0)   # exercise the zero-object-box masks
        targets.append({
            'obj_labels': jax.random.randint(kk[0], (n,), 0, num_obj_classes),
            'verb_labels': (jax.random.uniform(kk[1], (n, num_verb_classes)) > 0.7).astype(jnp.float32),
            'sub_boxes': _rand_boxes(kk[2], (n,)),
            'obj_boxes': obj_boxes,
        })

    matcher = HungarianMatcherHOI()
    cost = jax.block_until_ready(matcher.cost_matrix(outputs, targets))   # Pallas kernel

    # correctness check against a pure-JAX reference of the PyTorch cost matrix
    # (tolerance covers the approx-reciprocal GIoU path, error ~2^-12 relative)
    ref = _reference_cost(outputs, targets, 1.0, 1.0, 1.0, 1.0)
    cost_np = np.asarray(cost)
    assert np.all(np.isfinite(cost_np))
    np.testing.assert_allclose(cost_np, np.asarray(ref), rtol=5e-3, atol=5e-3)

    # full forward path: kernel -> host un-padding -> Hungarian assignment
    indices = matcher(outputs, targets)

    # basic sanity: one (query, target) pair per ground-truth target, all unique
    assert len(indices) == bs
    for b in range(bs):
        qi, ti = indices[b]
        assert qi.shape[0] == sizes[b] and ti.shape[0] == sizes[b]
        assert len(set(qi.tolist())) == sizes[b] and len(set(ti.tolist())) == sizes[b]

    print("KERNEL_OK")
</pallas_src>

<mosaic_0001>
module attributes {stable_mosaic.version = 11 : i64} {
  func.func @_hoi_cost_kernel(%arg0: i32, %arg1: i32, %arg2: memref<8x12xf32, #tpu.memory_space<vmem>>, %arg3: memref<8x10xf32, #tpu.memory_space<vmem>>, %arg4: memref<8x8xf32, #tpu.memory_space<vmem>>, %arg5: memref<12x128xf32, #tpu.memory_space<vmem>>, %arg6: memref<10x128xf32, #tpu.memory_space<vmem>>, %arg7: memref<8x128xf32, #tpu.memory_space<vmem>>, %arg8: memref<8x128xf32, #tpu.memory_space<vmem>>, %arg9: memref<8x128xf32, #tpu.memory_space<vmem>>) attributes {dimension_semantics = [#tpu.dimension_semantics<parallel>, #tpu.dimension_semantics<parallel>], iteration_bounds = array<i64: 2, 1>, scalar_prefetch = 0 : i64, scratch_operands = 0 : i64, tpu.core_type = #tpu.core_type<tc>, window_params = [{transform_indices = @transform_0, window_bounds = array<i64: 8, 12>}, {transform_indices = @transform_1, window_bounds = array<i64: 8, 10>}, {transform_indices = @transform_2, window_bounds = array<i64: 8, 8>}, {pipeline_mode = #tpu.pipeline_mode<synchronous>, transform_indices = @transform_3, window_bounds = array<i64: 12, 128>}, {pipeline_mode = #tpu.pipeline_mode<synchronous>, transform_indices = @transform_4, window_bounds = array<i64: 10, 128>}, {pipeline_mode = #tpu.pipeline_mode<synchronous>, transform_indices = @transform_5, window_bounds = array<i64: 8, 128>}, {pipeline_mode = #tpu.pipeline_mode<synchronous>, transform_indices = @transform_6, window_bounds = array<i64: 8, 128>}, {transform_indices = @transform_7, window_bounds = array<i64: 8, 128>}]} {
    %c0 = arith.constant 0 : index
    %c0_0 = arith.constant 0 : index
    %0 = vector.load %arg8[%c0, %c0_0] : memref<8x128xf32, #tpu.memory_space<vmem>>, vector<8x128xf32>
    %1 = vector.extract_strided_slice %0 {offsets = [0, 0], sizes = [1, 128], strides = [1, 1]} : vector<8x128xf32> to vector<1x128xf32>
    %2 = vector.extract_strided_slice %0 {offsets = [1, 0], sizes = [1, 128], strides = [1, 1]} : vector<8x128xf32> to vector<1x128xf32>
    %3 = vector.extract_strided_slice %0 {offsets = [2, 0], sizes = [1, 128], strides = [1, 1]} : vector<8x128xf32> to vector<1x128xf32>
    %4 = vector.extract_strided_slice %0 {offsets = [3, 0], sizes = [1, 128], strides = [1, 1]} : vector<8x128xf32> to vector<1x128xf32>
    %5 = vector.extract_strided_slice %0 {offsets = [4, 0], sizes = [1, 128], strides = [1, 1]} : vector<8x128xf32> to vector<1x128xf32>
    %c0_1 = arith.constant 0 : index
    %c0_2 = arith.constant 0 : index
    %6 = vector.load %arg2[%c0_1, %c0_2] : memref<8x12xf32, #tpu.memory_space<vmem>>, vector<8x12xf32>
    %cst = arith.constant dense<0xFF800000> : vector<8xf32>
    %7 = vector.multi_reduction <maximumf>, %6, %cst [1] : vector<8x12xf32> to vector<8xf32>
    %8 = vector.shape_cast %7 : vector<8xf32> to vector<8x1xf32>
    %9 = vector.broadcast %8 : vector<8x1xf32> to vector<8x12xf32>
    %10 = arith.subf %6, %9 : vector<8x12xf32>
    %11 = math.exp %10 : vector<8x12xf32>
    %cst_3 = arith.constant dense<0.000000e+00> : vector<8xf32>
    %12 = vector.multi_reduction <add>, %11, %cst_3 [1] : vector<8x12xf32> to vector<8xf32>
    %13 = vector.shape_cast %12 : vector<8xf32> to vector<8x1xf32>
    %cst_4 = arith.constant 1.000000e+00 : f32
    %14 = vector.broadcast %cst_4 : f32 to vector<8x1xf32>
    %15 = arith.divf %14, %13 : vector<8x1xf32>
    %c0_5 = arith.constant 0 : index
    %c0_6 = arith.constant 0 : index
    %16 = vector.load %arg5[%c0_5, %c0_6] : memref<12x128xf32, #tpu.memory_space<vmem>>, vector<12x128xf32>
    %cst_7 = arith.constant dense<0.000000e+00> : vector<8x128xf32>
    %17 = tpu.matmul %11, %16, %cst_7 {dimension_numbers = #tpu.dot_dimension_numbers<[1], [0], [0], [1], [0, 0, 1, 1], [], []>} : vector<8x12xf32>, vector<12x128xf32>, vector<8x128xf32> -> vector<8x128xf32>
    %18 = vector.broadcast %15 : vector<8x1xf32> to vector<8x128xf32>
    %19 = arith.mulf %17, %18 : vector<8x128xf32>
    %cst_8 = arith.constant -1.000000e+00 : f32
    %20 = vector.broadcast %cst_8 : f32 to vector<8x128xf32>
    %21 = arith.mulf %20, %19 : vector<8x128xf32>
    %c0_9 = arith.constant 0 : index
    %c0_10 = arith.constant 0 : index
    %22 = vector.load %arg3[%c0_9, %c0_10] : memref<8x10xf32, #tpu.memory_space<vmem>>, vector<8x10xf32>
    %cst_11 = arith.constant 0.000000e+00 : f32
    %23 = vector.broadcast %cst_11 : f32 to vector<8x10xf32>
    %24 = arith.subf %23, %22 : vector<8x10xf32>
    %25 = math.exp %24 : vector<8x10xf32>
    %cst_12 = arith.constant 1.000000e+00 : f32
    %26 = vector.broadcast %cst_12 : f32 to vector<8x10xf32>
    %27 = arith.addf %26, %25 : vector<8x10xf32>
    %cst_13 = arith.constant 1.000000e+00 : f32
    %28 = vector.broadcast %cst_13 : f32 to vector<8x10xf32>
    %29 = arith.divf %28, %27 : vector<8x10xf32>
    %c0_14 = arith.constant 0 : index
    %c0_15 = arith.constant 0 : index
    %30 = vector.load %arg6[%c0_14, %c0_15] : memref<10x128xf32, #tpu.memory_space<vmem>>, vector<10x128xf32>
    %cst_16 = arith.constant dense<0.000000e+00> : vector<8x128xf32>
    %31 = tpu.matmul %29, %30, %cst_16 {dimension_numbers = #tpu.dot_dimension_numbers<[1], [0], [0], [1], [0, 0, 1, 1], [], []>} : vector<8x10xf32>, vector<10x128xf32>, vector<8x128xf32> -> vector<8x128xf32>
    %cst_17 = arith.constant dense<0.000000e+00> : vector<8xf32>
    %32 = vector.multi_reduction <add>, %29, %cst_17 [1] : vector<8x10xf32> to vector<8xf32>
    %33 = vector.shape_cast %32 : vector<8xf32> to vector<8x1xf32>
    %34 = vector.broadcast %3 : vector<1x128xf32> to vector<8x128xf32>
    %35 = vector.broadcast %33 : vector<8x1xf32> to vector<8x128xf32>
    %36 = arith.subf %34, %35 : vector<8x128xf32>
    %37 = arith.addf %36, %31 : vector<8x128xf32>
    %38 = vector.broadcast %1 : vector<1x128xf32> to vector<8x128xf32>
    %39 = arith.mulf %31, %38 : vector<8x128xf32>
    %40 = vector.broadcast %2 : vector<1x128xf32> to vector<8x128xf32>
    %41 = arith.mulf %37, %40 : vector<8x128xf32>
    %42 = arith.addf %39, %41 : vector<8x128xf32>
    %cst_18 = arith.constant -5.000000e-01 : f32
    %43 = vector.broadcast %cst_18 : f32 to vector<8x128xf32>
    %44 = arith.mulf %43, %42 : vector<8x128xf32>
    %45 = arith.addf %21, %44 : vector<8x128xf32>
    %c0_19 = arith.constant 0 : index
    %c0_20 = arith.constant 0 : index
    %46 = vector.load %arg4[%c0_19, %c0_20] : memref<8x8xf32, #tpu.memory_space<vmem>>, vector<8x8xf32>
    %47 = vector.extract_strided_slice %46 {offsets = [0, 0], sizes = [8, 4], strides = [1, 1]} : vector<8x8xf32> to vector<8x4xf32>
    %48 = vector.extract_strided_slice %46 {offsets = [0, 4], sizes = [8, 4], strides = [1, 1]} : vector<8x8xf32> to vector<8x4xf32>
    %c0_21 = arith.constant 0 : index
    %c0_22 = arith.constant 0 : index
    %49 = vector.load %arg7[%c0_21, %c0_22] : memref<8x128xf32, #tpu.memory_space<vmem>>, vector<8x128xf32>
    %50 = vector.extract_strided_slice %49 {offsets = [0, 0], sizes = [4, 128], strides = [1, 1]} : vector<8x128xf32> to vector<4x128xf32>
    %51 = vector.extract_strided_slice %49 {offsets = [4, 0], sizes = [4, 128], strides = [1, 1]} : vector<8x128xf32> to vector<4x128xf32>
    %52 = vector.extract_strided_slice %47 {offsets = [0, 0], sizes = [8, 1], strides = [1, 1]} : vector<8x4xf32> to vector<8x1xf32>
    %53 = vector.extract_strided_slice %50 {offsets = [0, 0], sizes = [1, 128], strides = [1, 1]} : vector<4x128xf32> to vector<1x128xf32>
    %54 = vector.broadcast %52 : vector<8x1xf32> to vector<8x128xf32>
    %55 = vector.broadcast %53 : vector<1x128xf32> to vector<8x128xf32>
    %56 = arith.subf %54, %55 : vector<8x128xf32>
    %57 = math.absf %56 : vector<8x128xf32>
    %58 = vector.extract_strided_slice %47 {offsets = [0, 1], sizes = [8, 1], strides = [1, 1]} : vector<8x4xf32> to vector<8x1xf32>
    %59 = vector.extract_strided_slice %50 {offsets = [1, 0], sizes = [1, 128], strides = [1, 1]} : vector<4x128xf32> to vector<1x128xf32>
    %60 = vector.broadcast %58 : vector<8x1xf32> to vector<8x128xf32>
    %61 = vector.broadcast %59 : vector<1x128xf32> to vector<8x128xf32>
    %62 = arith.subf %60, %61 : vector<8x128xf32>
    %63 = math.absf %62 : vector<8x128xf32>
    %64 = arith.addf %57, %63 : vector<8x128xf32>
    %65 = vector.extract_strided_slice %47 {offsets = [0, 2], sizes = [8, 1], strides = [1, 1]} : vector<8x4xf32> to vector<8x1xf32>
    %66 = vector.extract_strided_slice %50 {offsets = [2, 0], sizes = [1, 128], strides = [1, 1]} : vector<4x128xf32> to vector<1x128xf32>
    %67 = vector.broadcast %65 : vector<8x1xf32> to vector<8x128xf32>
    %68 = vector.broadcast %66 : vector<1x128xf32> to vector<8x128xf32>
    %69 = arith.subf %67, %68 : vector<8x128xf32>
    %70 = math.absf %69 : vector<8x128xf32>
    %71 = arith.addf %64, %70 : vector<8x128xf32>
    %72 = vector.extract_strided_slice %47 {offsets = [0, 3], sizes = [8, 1], strides = [1, 1]} : vector<8x4xf32> to vector<8x1xf32>
    %73 = vector.extract_strided_slice %50 {offsets = [3, 0], sizes = [1, 128], strides = [1, 1]} : vector<4x128xf32> to vector<1x128xf32>
    %74 = vector.broadcast %72 : vector<8x1xf32> to vector<8x128xf32>
    %75 = vector.broadcast %73 : vector<1x128xf32> to vector<8x128xf32>
    %76 = arith.subf %74, %75 : vector<8x128xf32>
    %77 = math.absf %76 : vector<8x128xf32>
    %78 = arith.addf %71, %77 : vector<8x128xf32>
    %79 = vector.extract_strided_slice %48 {offsets = [0, 0], sizes = [8, 1], strides = [1, 1]} : vector<8x4xf32> to vector<8x1xf32>
    %80 = vector.extract_strided_slice %51 {offsets = [0, 0], sizes = [1, 128], strides = [1, 1]} : vector<4x128xf32> to vector<1x128xf32>
    %81 = vector.broadcast %79 : vector<8x1xf32> to vector<8x128xf32>
    %82 = vector.broadcast %80 : vector<1x128xf32> to vector<8x128xf32>
    %83 = arith.subf %81, %82 : vector<8x128xf32>
    %84 = math.absf %83 : vector<8x128xf32>
    %85 = vector.extract_strided_slice %48 {offsets = [0, 1], sizes = [8, 1], strides = [1, 1]} : vector<8x4xf32> to vector<8x1xf32>
    %86 = vector.extract_strided_slice %51 {offsets = [1, 0], sizes = [1, 128], strides = [1, 1]} : vector<4x128xf32> to vector<1x128xf32>
    %87 = vector.broadcast %85 : vector<8x1xf32> to vector<8x128xf32>
    %88 = vector.broadcast %86 : vector<1x128xf32> to vector<8x128xf32>
    %89 = arith.subf %87, %88 : vector<8x128xf32>
    %90 = math.absf %89 : vector<8x128xf32>
    %91 = arith.addf %84, %90 : vector<8x128xf32>
    %92 = vector.extract_strided_slice %48 {offsets = [0, 2], sizes = [8, 1], strides = [1, 1]} : vector<8x4xf32> to vector<8x1xf32>
    %93 = vector.extract_strided_slice %51 {offsets = [2, 0], sizes = [1, 128], strides = [1, 1]} : vector<4x128xf32> to vector<1x128xf32>
    %94 = vector.broadcast %92 : vector<8x1xf32> to vector<8x128xf32>
    %95 = vector.broadcast %93 : vector<1x128xf32> to vector<8x128xf32>
    %96 = arith.subf %94, %95 : vector<8x128xf32>
    %97 = math.absf %96 : vector<8x128xf32>
    %98 = arith.addf %91, %97 : vector<8x128xf32>
    %99 = vector.extract_strided_slice %48 {offsets = [0, 3], sizes = [8, 1], strides = [1, 1]} : vector<8x4xf32> to vector<8x1xf32>
    %100 = vector.extract_strided_slice %51 {offsets = [3, 0], sizes = [1, 128], strides = [1, 1]} : vector<4x128xf32> to vector<1x128xf32>
    %101 = vector.broadcast %99 : vector<8x1xf32> to vector<8x128xf32>
    %102 = vector.broadcast %100 : vector<1x128xf32> to vector<8x128xf32>
    %103 = arith.subf %101, %102 : vector<8x128xf32>
    %104 = math.absf %103 : vector<8x128xf32>
    %105 = arith.addf %98, %104 : vector<8x128xf32>
    %106 = vector.broadcast %4 : vector<1x128xf32> to vector<8x128xf32>
    %107 = arith.mulf %105, %106 : vector<8x128xf32>
    %108 = arith.maximumf %78, %107 : vector<8x128xf32>
    %cst_23 = arith.constant 1.000000e+00 : f32
    %109 = vector.broadcast %cst_23 : f32 to vector<8x128xf32>
    %110 = arith.mulf %109, %108 : vector<8x128xf32>
    %111 = arith.addf %45, %110 : vector<8x128xf32>
    %112 = vector.extract_strided_slice %47 {offsets = [0, 0], sizes = [8, 1], strides = [1, 1]} : vector<8x4xf32> to vector<8x1xf32>
    %113 = vector.extract_strided_slice %47 {offsets = [0, 1], sizes = [8, 1], strides = [1, 1]} : vector<8x4xf32> to vector<8x1xf32>
    %114 = vector.extract_strided_slice %47 {offsets = [0, 2], sizes = [8, 1], strides = [1, 1]} : vector<8x4xf32> to vector<8x1xf32>
    %115 = vector.extract_strided_slice %47 {offsets = [0, 3], sizes = [8, 1], strides = [1, 1]} : vector<8x4xf32> to vector<8x1xf32>
    %116 = vector.extract_strided_slice %50 {offsets = [0, 0], sizes = [1, 128], strides = [1, 1]} : vector<4x128xf32> to vector<1x128xf32>
    %117 = vector.extract_strided_slice %50 {offsets = [1, 0], sizes = [1, 128], strides = [1, 1]} : vector<4x128xf32> to vector<1x128xf32>
    %118 = vector.extract_strided_slice %50 {offsets = [2, 0], sizes = [1, 128], strides = [1, 1]} : vector<4x128xf32> to vector<1x128xf32>
    %119 = vector.extract_strided_slice %50 {offsets = [3, 0], sizes = [1, 128], strides = [1, 1]} : vector<4x128xf32> to vector<1x128xf32>
    %cst_24 = arith.constant 5.000000e-01 : f32
    %120 = vector.broadcast %cst_24 : f32 to vector<8x1xf32>
    %121 = arith.mulf %120, %114 : vector<8x1xf32>
    %122 = arith.subf %112, %121 : vector<8x1xf32>
    %cst_25 = arith.constant 5.000000e-01 : f32
    %123 = vector.broadcast %cst_25 : f32 to vector<8x1xf32>
    %124 = arith.mulf %123, %115 : vector<8x1xf32>
    %125 = arith.subf %113, %124 : vector<8x1xf32>
    %cst_26 = arith.constant 5.000000e-01 : f32
    %126 = vector.broadcast %cst_26 : f32 to vector<8x1xf32>
    %127 = arith.mulf %126, %114 : vector<8x1xf32>
    %128 = arith.addf %112, %127 : vector<8x1xf32>
    %cst_27 = arith.constant 5.000000e-01 : f32
    %129 = vector.broadcast %cst_27 : f32 to vector<8x1xf32>
    %130 = arith.mulf %129, %115 : vector<8x1xf32>
    %131 = arith.addf %113, %130 : vector<8x1xf32>
    %cst_28 = arith.constant 5.000000e-01 : f32
    %132 = vector.broadcast %cst_28 : f32 to vector<1x128xf32>
    %133 = arith.mulf %132, %118 : vector<1x128xf32>
    %134 = arith.subf %116, %133 : vector<1x128xf32>
    %cst_29 = arith.constant 5.000000e-01 : f32
    %135 = vector.broadcast %cst_29 : f32 to vector<1x128xf32>
    %136 = arith.mulf %135, %119 : vector<1x128xf32>
    %137 = arith.subf %117, %136 : vector<1x128xf32>
    %cst_30 = arith.constant 5.000000e-01 : f32
    %138 = vector.broadcast %cst_30 : f32 to vector<1x128xf32>
    %139 = arith.mulf %138, %118 : vector<1x128xf32>
    %140 = arith.addf %116, %139 : vector<1x128xf32>
    %cst_31 = arith.constant 5.000000e-01 : f32
    %141 = vector.broadcast %cst_31 : f32 to vector<1x128xf32>
    %142 = arith.mulf %141, %119 : vector<1x128xf32>
    %143 = arith.addf %117, %142 : vector<1x128xf32>
    %144 = arith.subf %128, %122 : vector<8x1xf32>
    %145 = arith.subf %131, %125 : vector<8x1xf32>
    %146 = arith.mulf %144, %145 : vector<8x1xf32>
    %147 = arith.subf %140, %134 : vector<1x128xf32>
    %148 = arith.subf %143, %137 : vector<1x128xf32>
    %149 = arith.mulf %147, %148 : vector<1x128xf32>
    %150 = vector.broadcast %128 : vector<8x1xf32> to vector<8x128xf32>
    %151 = vector.broadcast %140 : vector<1x128xf32> to vector<8x128xf32>
    %152 = arith.minimumf %150, %151 : vector<8x128xf32>
    %153 = vector.broadcast %122 : vector<8x1xf32> to vector<8x128xf32>
    %154 = vector.broadcast %134 : vector<1x128xf32> to vector<8x128xf32>
    %155 = arith.maximumf %153, %154 : vector<8x128xf32>
    %156 = arith.subf %152, %155 : vector<8x128xf32>
    %cst_32 = arith.constant 0.000000e+00 : f32
    %157 = vector.broadcast %cst_32 : f32 to vector<8x128xf32>
    %158 = arith.maximumf %156, %157 : vector<8x128xf32>
    %159 = vector.broadcast %131 : vector<8x1xf32> to vector<8x128xf32>
    %160 = vector.broadcast %143 : vector<1x128xf32> to vector<8x128xf32>
    %161 = arith.minimumf %159, %160 : vector<8x128xf32>
    %162 = vector.broadcast %125 : vector<8x1xf32> to vector<8x128xf32>
    %163 = vector.broadcast %137 : vector<1x128xf32> to vector<8x128xf32>
    %164 = arith.maximumf %162, %163 : vector<8x128xf32>
    %165 = arith.subf %161, %164 : vector<8x128xf32>
    %cst_33 = arith.constant 0.000000e+00 : f32
    %166 = vector.broadcast %cst_33 : f32 to vector<8x128xf32>
    %167 = arith.maximumf %165, %166 : vector<8x128xf32>
    %168 = arith.mulf %158, %167 : vector<8x128xf32>
    %169 = vector.broadcast %146 : vector<8x1xf32> to vector<8x128xf32>
    %170 = vector.broadcast %149 : vector<1x128xf32> to vector<8x128xf32>
    %171 = arith.addf %169, %170 : vector<8x128xf32>
    %172 = arith.subf %171, %168 : vector<8x128xf32>
    %173 = vector.broadcast %128 : vector<8x1xf32> to vector<8x128xf32>
    %174 = vector.broadcast %140 : vector<1x128xf32> to vector<8x128xf32>
    %175 = arith.maximumf %173, %174 : vector<8x128xf32>
    %176 = vector.broadcast %122 : vector<8x1xf32> to vector<8x128xf32>
    %177 = vector.broadcast %134 : vector<1x128xf32> to vector<8x128xf32>
    %178 = arith.minimumf %176, %177 : vector<8x128xf32>
    %179 = arith.subf %175, %178 : vector<8x128xf32>
    %180 = vector.broadcast %131 : vector<8x1xf32> to vector<8x128xf32>
    %181 = vector.broadcast %143 : vector<1x128xf32> to vector<8x128xf32>
    %182 = arith.maximumf %180, %181 : vector<8x128xf32>
    %183 = vector.broadcast %125 : vector<8x1xf32> to vector<8x128xf32>
    %184 = vector.broadcast %137 : vector<1x128xf32> to vector<8x128xf32>
    %185 = arith.minimumf %183, %184 : vector<8x128xf32>
    %186 = arith.subf %182, %185 : vector<8x128xf32>
    %187 = arith.mulf %179, %186 : vector<8x128xf32>
    %188 = tpu.reciprocal %172 {approx = true} : vector<8x128xf32> -> vector<8x128xf32>
    %189 = arith.mulf %168, %188 : vector<8x128xf32>
    %190 = tpu.reciprocal %187 {approx = true} : vector<8x128xf32> -> vector<8x128xf32>
    %191 = arith.mulf %172, %190 : vector<8x128xf32>
    %192 = arith.addf %189, %191 : vector<8x128xf32>
    %cst_34 = arith.constant 1.000000e+00 : f32
    %193 = vector.broadcast %cst_34 : f32 to vector<8x128xf32>
    %194 = arith.subf %192, %193 : vector<8x128xf32>
    %cst_35 = arith.constant 0.000000e+00 : f32
    %195 = vector.broadcast %cst_35 : f32 to vector<8x128xf32>
    %196 = arith.subf %195, %194 : vector<8x128xf32>
    %197 = vector.extract_strided_slice %48 {offsets = [0, 0], sizes = [8, 1], strides = [1, 1]} : vector<8x4xf32> to vector<8x1xf32>
    %198 = vector.extract_strided_slice %48 {offsets = [0, 1], sizes = [8, 1], strides = [1, 1]} : vector<8x4xf32> to vector<8x1xf32>
    %199 = vector.extract_strided_slice %48 {offsets = [0, 2], sizes = [8, 1], strides = [1, 1]} : vector<8x4xf32> to vector<8x1xf32>
    %200 = vector.extract_strided_slice %48 {offsets = [0, 3], sizes = [8, 1], strides = [1, 1]} : vector<8x4xf32> to vector<8x1xf32>
    %201 = vector.extract_strided_slice %51 {offsets = [0, 0], sizes = [1, 128], strides = [1, 1]} : vector<4x128xf32> to vector<1x128xf32>
    %202 = vector.extract_strided_slice %51 {offsets = [1, 0], sizes = [1, 128], strides = [1, 1]} : vector<4x128xf32> to vector<1x128xf32>
    %203 = vector.extract_strided_slice %51 {offsets = [2, 0], sizes = [1, 128], strides = [1, 1]} : vector<4x128xf32> to vector<1x128xf32>
    %204 = vector.extract_strided_slice %51 {offsets = [3, 0], sizes = [1, 128], strides = [1, 1]} : vector<4x128xf32> to vector<1x128xf32>
    %cst_36 = arith.constant 5.000000e-01 : f32
    %205 = vector.broadcast %cst_36 : f32 to vector<8x1xf32>
    %206 = arith.mulf %205, %199 : vector<8x1xf32>
    %207 = arith.subf %197, %206 : vector<8x1xf32>
    %cst_37 = arith.constant 5.000000e-01 : f32
    %208 = vector.broadcast %cst_37 : f32 to vector<8x1xf32>
    %209 = arith.mulf %208, %200 : vector<8x1xf32>
    %210 = arith.subf %198, %209 : vector<8x1xf32>
    %cst_38 = arith.constant 5.000000e-01 : f32
    %211 = vector.broadcast %cst_38 : f32 to vector<8x1xf32>
    %212 = arith.mulf %211, %199 : vector<8x1xf32>
    %213 = arith.addf %197, %212 : vector<8x1xf32>
    %cst_39 = arith.constant 5.000000e-01 : f32
    %214 = vector.broadcast %cst_39 : f32 to vector<8x1xf32>
    %215 = arith.mulf %214, %200 : vector<8x1xf32>
    %216 = arith.addf %198, %215 : vector<8x1xf32>
    %cst_40 = arith.constant 5.000000e-01 : f32
    %217 = vector.broadcast %cst_40 : f32 to vector<1x128xf32>
    %218 = arith.mulf %217, %203 : vector<1x128xf32>
    %219 = arith.subf %201, %218 : vector<1x128xf32>
    %cst_41 = arith.constant 5.000000e-01 : f32
    %220 = vector.broadcast %cst_41 : f32 to vector<1x128xf32>
    %221 = arith.mulf %220, %204 : vector<1x128xf32>
    %222 = arith.subf %202, %221 : vector<1x128xf32>
    %cst_42 = arith.constant 5.000000e-01 : f32
    %223 = vector.broadcast %cst_42 : f32 to vector<1x128xf32>
    %224 = arith.mulf %223, %203 : vector<1x128xf32>
    %225 = arith.addf %201, %224 : vector<1x128xf32>
    %cst_43 = arith.constant 5.000000e-01 : f32
    %226 = vector.broadcast %cst_43 : f32 to vector<1x128xf32>
    %227 = arith.mulf %226, %204 : vector<1x128xf32>
    %228 = arith.addf %202, %227 : vector<1x128xf32>
    %229 = arith.subf %213, %207 : vector<8x1xf32>
    %230 = arith.subf %216, %210 : vector<8x1xf32>
    %231 = arith.mulf %229, %230 : vector<8x1xf32>
    %232 = arith.subf %225, %219 : vector<1x128xf32>
    %233 = arith.subf %228, %222 : vector<1x128xf32>
    %234 = arith.mulf %232, %233 : vector<1x128xf32>
    %235 = vector.broadcast %213 : vector<8x1xf32> to vector<8x128xf32>
    %236 = vector.broadcast %225 : vector<1x128xf32> to vector<8x128xf32>
    %237 = arith.minimumf %235, %236 : vector<8x128xf32>
    %238 = vector.broadcast %207 : vector<8x1xf32> to vector<8x128xf32>
    %239 = vector.broadcast %219 : vector<1x128xf32> to vector<8x128xf32>
    %240 = arith.maximumf %238, %239 : vector<8x128xf32>
    %241 = arith.subf %237, %240 : vector<8x128xf32>
    %cst_44 = arith.constant 0.000000e+00 : f32
    %242 = vector.broadcast %cst_44 : f32 to vector<8x128xf32>
    %243 = arith.maximumf %241, %242 : vector<8x128xf32>
    %244 = vector.broadcast %216 : vector<8x1xf32> to vector<8x128xf32>
    %245 = vector.broadcast %228 : vector<1x128xf32> to vector<8x128xf32>
    %246 = arith.minimumf %244, %245 : vector<8x128xf32>
    %247 = vector.broadcast %210 : vector<8x1xf32> to vector<8x128xf32>
    %248 = vector.broadcast %222 : vector<1x128xf32> to vector<8x128xf32>
    %249 = arith.maximumf %247, %248 : vector<8x128xf32>
    %250 = arith.subf %246, %249 : vector<8x128xf32>
    %cst_45 = arith.constant 0.000000e+00 : f32
    %251 = vector.broadcast %cst_45 : f32 to vector<8x128xf32>
    %252 = arith.maximumf %250, %251 : vector<8x128xf32>
    %253 = arith.mulf %243, %252 : vector<8x128xf32>
    %254 = vector.broadcast %231 : vector<8x1xf32> to vector<8x128xf32>
    %255 = vector.broadcast %234 : vector<1x128xf32> to vector<8x128xf32>
    %256 = arith.addf %254, %255 : vector<8x128xf32>
    %257 = arith.subf %256, %253 : vector<8x128xf32>
    %258 = vector.broadcast %213 : vector<8x1xf32> to vector<8x128xf32>
    %259 = vector.broadcast %225 : vector<1x128xf32> to vector<8x128xf32>
    %260 = arith.maximumf %258, %259 : vector<8x128xf32>
    %261 = vector.broadcast %207 : vector<8x1xf32> to vector<8x128xf32>
    %262 = vector.broadcast %219 : vector<1x128xf32> to vector<8x128xf32>
    %263 = arith.minimumf %261, %262 : vector<8x128xf32>
    %264 = arith.subf %260, %263 : vector<8x128xf32>
    %265 = vector.broadcast %216 : vector<8x1xf32> to vector<8x128xf32>
    %266 = vector.broadcast %228 : vector<1x128xf32> to vector<8x128xf32>
    %267 = arith.maximumf %265, %266 : vector<8x128xf32>
    %268 = vector.broadcast %210 : vector<8x1xf32> to vector<8x128xf32>
    %269 = vector.broadcast %222 : vector<1x128xf32> to vector<8x128xf32>
    %270 = arith.minimumf %268, %269 : vector<8x128xf32>
    %271 = arith.subf %267, %270 : vector<8x128xf32>
    %272 = arith.mulf %264, %271 : vector<8x128xf32>
    %273 = tpu.reciprocal %257 {approx = true} : vector<8x128xf32> -> vector<8x128xf32>
    %274 = arith.mulf %253, %273 : vector<8x128xf32>
    %275 = tpu.reciprocal %272 {approx = true} : vector<8x128xf32> -> vector<8x128xf32>
    %276 = arith.mulf %257, %275 : vector<8x128xf32>
    %277 = arith.addf %274, %276 : vector<8x128xf32>
    %cst_46 = arith.constant 1.000000e+00 : f32
    %278 = vector.broadcast %cst_46 : f32 to vector<8x128xf32>
    %279 = arith.subf %277, %278 : vector<8x128xf32>
    %cst_47 = arith.constant 0.000000e+00 : f32
    %280 = vector.broadcast %cst_47 : f32 to vector<8x128xf32>
    %281 = arith.subf %280, %279 : vector<8x128xf32>
    %282 = vector.broadcast %5 : vector<1x128xf32> to vector<8x128xf32>
    %283 = arith.mulf %196, %282 : vector<8x128xf32>
    %284 = arith.addf %281, %283 : vector<8x128xf32>
    %285 = arith.maximumf %196, %284 : vector<8x128xf32>
    %cst_48 = arith.constant 1.000000e+00 : f32
    %286 = vector.broadcast %cst_48 : f32 to vector<8x128xf32>
    %287 = arith.mulf %286, %285 : vector<8x128xf32>
    %288 = arith.addf %111, %287 : vector<8x128xf32>
    %c0_49 = arith.constant 0 : index
    %c0_50 = arith.constant 0 : index
    %289 = vector.load %arg9[%c0_49, %c0_50] : memref<8x128xf32, #tpu.memory_space<vmem>>, vector<8x128xf32>
    tpu.vector_store %arg9[%c0_49, %c0_50], %288 {strides = array<i32>} : memref<8x128xf32, #tpu.memory_space<vmem>>, vector<8x128xf32>,
    return
  }
  func.func @transform_0(%arg0: i32, %arg1: i32) -> (i32, i32) {
    %c0_i32 = arith.constant 0 : i32
    %c0_i32_0 = arith.constant 0 : i32
    return %arg0, %c0_i32 : i32, i32
  }
  func.func @transform_1(%arg0: i32, %arg1: i32) -> (i32, i32) {
    %c0_i32 = arith.constant 0 : i32
    %c0_i32_0 = arith.constant 0 : i32
    return %arg0, %c0_i32 : i32, i32
  }
  func.func @transform_2(%arg0: i32, %arg1: i32) -> (i32, i32) {
    %c0_i32 = arith.constant 0 : i32
    %c0_i32_0 = arith.constant 0 : i32
    return %arg0, %c0_i32 : i32, i32
  }
  func.func @transform_3(%arg0: i32, %arg1: i32) -> (i32, i32) {
    %c0_i32 = arith.constant 0 : i32
    %c0_i32_0 = arith.constant 0 : i32
    return %c0_i32, %arg1 : i32, i32
  }
  func.func @transform_4(%arg0: i32, %arg1: i32) -> (i32, i32) {
    %c0_i32 = arith.constant 0 : i32
    %c0_i32_0 = arith.constant 0 : i32
    return %c0_i32, %arg1 : i32, i32
  }
  func.func @transform_5(%arg0: i32, %arg1: i32) -> (i32, i32) {
    %c0_i32 = arith.constant 0 : i32
    %c0_i32_0 = arith.constant 0 : i32
    return %c0_i32, %arg1 : i32, i32
  }
  func.func @transform_6(%arg0: i32, %arg1: i32) -> (i32, i32) {
    %c0_i32 = arith.constant 0 : i32
    %c0_i32_0 = arith.constant 0 : i32
    return %c0_i32, %arg1 : i32, i32
  }
  func.func @transform_7(%arg0: i32, %arg1: i32) -> (i32, i32) {
    %c0_i32 = arith.constant 0 : i32
    return %arg0, %arg1 : i32, i32
  }
}

</mosaic_0001>

<bundles_post_ra>
// kernel: tpu_custom_call.1
= control target key start
LH: loop header
LB: loop body
LE: loop exit
PB: predicated region body
PF: predicated region fallthrough
CT: control target
= control target key end

     0   :  { %s1757_s0 = inlined_call_operand.vmem [shape: f32[16,12], index: 0, kind: input, shape index: {}]   ;;  %s1758_s1 = inlined_call_operand.hbm [shape: f32[16,10], index: 1, kind: input, shape index: {}]   ;;  %s1759_s2 = inlined_call_operand.vmem [shape: f32[16,8], index: 2, kind: input, shape index: {}]   ;;  %s1760_s3 = inlined_call_operand.hbm [shape: f32[12,128], index: 3, kind: input, shape index: {}]   ;;  %s1761_s4 = inlined_call_operand.hbm [shape: f32[10,128], index: 4, kind: input, shape index: {}]   ;;  %s1762_s5 = inlined_call_operand.vmem [shape: f32[8,128], index: 5, kind: input, shape index: {}]   ;;  %s1763_s6 = inlined_call_operand.vmem [shape: f32[8,128], index: 6, kind: input, shape index: {}]   ;;  %s1764_s7 = inlined_call_operand.hbm [shape: f32[16,128], index: 7, kind: output, shape index: {}]  }
   0x1   :  { %1769 = sst [smem:[#allocation13_spill]] %s1760_s3 }
   0x2   :  { %1770 = sst [smem:[#allocation14_spill]] %s1761_s4 }
   0x3   :  { %12 = vsyncpa [#allocation3], 0 }
   0x4   :  { %14 = vsyncpa [#allocation3 + $0x1], 0 }
   0x5   :  { %15 = vsyncpa [#allocation6], 0 }
   0x6   :  { %16 = vsyncpa [#allocation4], 0 }
   0x7   :  { %18 = vsyncpa [#allocation4 + $0x1], 0  ;;  %s1456_s24 = smov 0   ;;  %s1458_s25 = smov 0  }
   0x8   :  { %s1460_s26 = smov 0   ;;  %s1462_s27 = smov 0  }
   0x9   :  { %s1464_s28 = smov 0   ;;  %s1466_s29 = smov 0  }
   0xa LB: > { %s1056_s30 = sadd.s32 4294967295, %s1396_s29   ;;  %s1057_s8 = sadd.s32 4294967294, %s1396_s29   ;;  %s1396_s29 = sphi %s1466_s29, %s24_s29   ;;  %s1392_s28 = sphi %s1464_s28, %s1791_s28   ;;  %s1388_s27 = sphi %s1462_s27, %s1790_s27   ;;  %s1384_s26 = sphi %s1460_s26, %s1789_s26   ;;  %s1380_s25 = sphi %s1458_s25, %s1788_s25   ;;  %s1376_s24 = sphi %s1456_s24, %s1787_s24  }
   0xb   : > { %p82_p0 = scmp.ne.s32.totalorder %s1380_s25, %s1376_s24  ;;  %p1490_p1 = scmp.eq.s32.totalorder %s1056_s30, 0 }
   0xc   : > { %p1494_p2 = scmp.eq.s32.totalorder %s1056_s30, 1  ;;  %p244_p3 = scmp.eq.s32.totalorder %s1057_s8, 1 }
   0xd   : > { %s1771_s9 = scalar_select %p1490_p1, 1, 0 }
   0xe   : > { %p1500_p4 = por %p1490_p1, %p82_p0  ;;  %p1058_p5 = scmp.ge.s32.totalorder %s1396_s29, 1 }
   0xf   : > { %p1505_p6 = por %p244_p3, %p82_p0  ;;  %p251_p7 = scmp.lt.s32.totalorder %s1396_s29, 3 }
  0x10   : > { %s1773_s11 = scalar_select %p1500_p4, 1, 0 }
  0x11   : > { %s1774_s12 = scalar_select %p1505_p6, 1, 0 }
  0x12   : > { %p1510_p8 = pnand %p1058_p5, %p251_p7  ;;  %s1398_s14 = smov [#allocation5]  }
  0x13   : > { %s265_s15 = sshll.u32 %s1398_s14, 4  ;;  %s1399_s17 = smov [#allocation7]   ;;  %s266_s15 = int_to_ptr.vmem [resolvable:$true] %s265_s15 }
  0x14   : > { %p1115_p9 = pneg %p1510_p8  ;;  %s280_s18 = sshll.u32 %s1399_s17, 4  ;;  %s281_s18 = int_to_ptr.vmem [resolvable:$true] %s280_s18 }
  0x15   : > { %s1243_s19 = scalar_lea.vmem %s266_s15, 256  ;;  %p1251_p5 = scmp.lt.s32.totalorder %s266_s15, %s266_s15 }
  0x16   : > { %p1519_p11 = pnand %p1115_p9, %p1490_p1  ;;  %p1244_p13 = scmp.ne.s32.totalorder %s266_s15, %s1243_s19 }
  0x17   : > { %p1252_p7 = scmp.lt.s32.totalorder %s1243_s19, %s1243_s19 }
  0x18   : > { %p1234_p12 = pneg %p1519_p11 }
  0x19   : > { %p1253_p10 = por %p1252_p7, %p1251_p5 }
  0x1a   : > { %p1246_p0 = pnand %p1244_p13, %p1234_p12 }
  0x1c   : > { %p1247_p3 = pneg %p1246_p0 }
  0x1e   : > { %p1254_p9 = pnand %p1253_p10, %p1247_p3 }
  0x20   : > { %1257 = shalt.err (!%p1254_p9)
}
  0x21   : > { %s1400_s20 = smov 128   ;;  %s1401_s21 = smov 8  }
  0x22   : > { %s1777_s3 = sld [smem:[#allocation13_spill]]  ;;  %s1269_s30 = scalar_lea.vmem %s281_s18, 256 }
  0x23   : > { %p1270_p6 = scmp.ne.s32.totalorder %s281_s18, %s1269_s30  ;;  %p1277_p1 = scmp.lt.s32.totalorder %s281_s18, %s281_s18 }
  0x24   : > { %p1278_p4 = scmp.lt.s32.totalorder %s1269_s30, %s1269_s30 }
  0x25   : > { %p1272_p13 = pnand %p1270_p6, %p1234_p12 }
  0x26   : > { %p1279_p5 = por %p1278_p4, %p1277_p1 }
  0x27   : > { %p1273_p0 = pneg %p1272_p13 }
  0x28   : > { %1118 = dma.hbm_to_vmem [thread:$0]  (!%p1519_p11), %s1777_s3, 256, %s266_s15, [#allocation6], %s1400_s20, %s1400_s20, %s1401_s21  }
  0x29   : > { %p1280_p10 = pnand %p1279_p5, %p1273_p0 }
  0x2b   : > { %1283 = shalt.err (!%p1280_p10)
}
  0x2c   : > { %s1778_s4 = sld [smem:[#allocation14_spill]]  ;;  %s36_s15 = sadd.s32 1, %s1392_s28 }
  0x2d   : > { %s69_s17 = sadd.s32 1, %s1384_s26  ;;  %p38_p1 = scmp.ge.s32.totalorder %s36_s15, 2 }
  0x2e   : > { %p76_p4 = scmp.ne.s32.totalorder %s1384_s26, %s1380_s25  ;;  %p77_p6 = scmp.eq.s32.totalorder %s1396_s29, 0 }
  0x2f   : > { %p1132_p12 = scmp.lt.s32.totalorder %s1396_s29, 2  ;;  %s1793_s15 = smov (%p38_p1, %s36_s15), 0 }
  0x30   : > { %1779 = sst [smem:[#allocation12_spill]] %s1793_s15  ;;  %p78_p3 = por %p77_p6, %p76_p4 }
  0x31   : > { %p1551_p7 = por %p1494_p2, %p76_p4  ;;  %s66_s19 = ssub.s32 %s1392_s28, %s1793_s15 }
  0x32   : > { %1121 = dma.hbm_to_vmem [thread:$0]  (!%p1519_p11), %s1778_s4, 256, %s281_s18, [#allocation6], %s1400_s20, %s1400_s20, %s1401_s21  }
  0x33   : > { %s315_s22 = sand.u32 1, %s1384_s26   ;;  %p67_p9 = scmp.eq.s32.totalorder %s66_s19, 0 }
  0x34   : > { %s1064_s18 = sshll.u32 %s315_s22, 3  ;;  %s1065_s20 = sshll.u32 %s1392_s28, 7 }
  0x35   : > { %s1560_s21 = scalar_select %p67_p9, %s1384_s26, %s69_s17  }
  0x36   : > { %s324_s8 = scalar_lea.hbm %s1758_s1, %s1065_s20  ;;  %s319_s14 = scalar_lea.vmem [#allocation2], %s1064_s18 }
  0x37   : > { %s326_s3 = sshll.u32 %s319_s14, 4  ;;  %p1567_p11 = pnand %p1132_p12, %p78_p3  ;;  %s327_s3 = int_to_ptr.vmem [resolvable:$true] %s326_s3 }
  0x38   : > { %s316_s4 = scalar_lea.sflag [#allocation3], %s315_s22  ;;  %s1297_s19 = scalar_lea.vmem %s327_s3, 128 }
  0x39   : > { %p1286_p2 = pneg %p1567_p11  ;;  %p1298_p13 = scmp.ne.s32.totalorder %s327_s3, %s1297_s19 }
  0x3a   : > { %s1402_s17 = smov [#allocation2]  }
  0x3b   : > { %p1300_p0 = pnand %p1298_p13, %p1286_p2  ;;  %s1302_s15 = sshll.u32 %s1402_s17, 4  ;;  %s1303_s15 = int_to_ptr.vmem [resolvable:$false] %s1302_s15 }
  0x3c   : > { %s1304_s20 = scalar_lea.vmem %s1303_s15, 256  ;;  %p1305_p10 = scmp.lt.s32.totalorder %s327_s3, %s1303_s15 }
  0x3d   : > { %p1301_p5 = pneg %p1300_p0  ;;  %p1306_p1 = scmp.lt.s32.totalorder %s1304_s20, %s1297_s19 }
  0x3f   : > { %p1307_p4 = por %p1306_p1, %p1305_p10 }
  0x41   : > { %p1308_p6 = pnand %p1307_p4, %p1301_p5 }
  0x43   : > { %1311 = shalt.err (!%p1308_p6)
}
  0x44   : > { %1125 = dma.hbm_to_vmem [thread:$0]  (!%p1567_p11), %s324_s8, 128, %s327_s3, %s316_s4  }
  0x45   : > { %342 = sbr.rel (%p1510_p8) target bundleno = 590 (0x24e), region = 48  ;;  %s1578_s22 = sand.u32 (!%p1510_p8), 1, %s1380_s25  }
  0x46   : > { %s1067_s18 = sshll.u32 (!%p1510_p8), %s1578_s22, 3  ;;  %s345_s23 = scalar_lea.sflag (!%p1510_p8), [#allocation3], %s1578_s22 }
  0x47   : > { %s1584_s15 = scalar_lea.vmem (!%p1510_p8), [#allocation2], %s1067_s18  ;;  %p1782_p12 = scmp.ne.s32.totalorder (!%p1510_p8), %s1773_s11, 0 }
  0x4a   : > { %1363 = dma.done.wait (%p1782_p12), %s345_s23, 128  }
  0x4b   : > { %1365 = vsyncadd (%p1782_p12), %s345_s23, 4294967168  ;;  %p1783_p3 = scmp.ne.s32.totalorder %s1771_s9, 0 }
  0x4d   : > { %1367 = dma.done.wait (%p1783_p3), [#allocation6], 512  }
  0x4e   : > { %1369 = vsyncadd (%p1783_p3), [#allocation6], 4294966784  ;;  %p403_p8 = scmp.lt.s32.totalorder %s1388_s27, 1  ;;  %vm421_vm0 = vcmask 97280   ;;  %v1403_v3 = vmov 5   ;;  %v1404_v4 = vmov 0   ;;  %v604_v30 = vlaneseq }
  0x4f   : > { %1203 = vset.pattern.permute.xlu0 %v1403_v3  ;;  %1200 = vset.pattern.permute.xlu1 %v1404_v4  ;;  %v1405_v6 = vmov 0.0   ;;  %s1406_s9 = smov 126   ;;  %v434_v7 = vld [vmem:[#allocation5 + $0x8] sm:$0xf]  ;;  %vm438_vm1 = vcmask 1043456   ;;  %v433_v8 = vld [vmem:[#allocation5] sm:$0xff] }
  0x50   : > { %s404_s3 = scalar_select %p403_p8, %s1388_s27, 1  ;;  %1089 = vmatprep.subr.mxu0 %v1405_v6  ;;  %1096 = vmatprep.subr.mxu1 %v1405_v6  ;;  %vm1407_vm2 = vmmov 0   ;;  %v514_v9 = vld [vmem:[%s1584_s15] sm:$0xff]  ;;  %vm527_vm3 = vcmask 1041408   ;;  %vm523_vm4 = vcmask 80896   ;;  %v1408_v23 = vmov 4  }
  0x51   : > { %1090 = vmatpush3.msk.msra.mxu0 %vm438_vm1, %v434_v7  ;;  %1093 = vmatprep.mubr.msk.f32.mxu0 %vm1407_vm2, %v1405_v6  ;;  %v515_v10 = vsub.f32 0.0, %v514_v9  ;;  %v522_v17 = vld [vmem:[#allocation7 + $0x8] sm:$0x3]  ;;  %v521_v20 = vld [vmem:[#allocation7] sm:$0xff]  ;;  %v1409_v24 = vmov 1   ;;  %s1410_s19 = smov 127  }
  0x52   : > { %s1071_s4 = sshll.u32 %s404_s3, 3  ;;  %1091 = vmatprep.subr.mxu0 %v1405_v6  ;;  %1100 = vmatprep.mubr.msk.f32.mxu1 %vm1407_vm2, %v1405_v6  ;;  %v1625_v29 = vld [vmem:[%s1762_s5] sm:$0xff]  ;;  %v1628_v32 = vshrl.u32 %v604_v30, 7  ;;  %s1080_s3 = sshll.u32 %s1388_s27, 7 }
  0x53   : > { %s406_s8 = scalar_lea.vmem %s1757_s0, %s1071_s4  ;;  %s410_s10 = scalar_lea.vmem %s1759_s2, %s1071_s4  ;;  %1092 = vmatpush3.msra.mxu0 %v433_v8  ;;  %v516_v11 = vmul.f32 1.442695, %v515_v10  ;;  %1097 = vmatpush3.msk.msra.mxu1 %vm527_vm3, %v522_v17  ;;  %v726_v31 = vmul.f32 0.5, %v1625_v29 }
  0x54   : > { %v420_v0 = vld [vmem:[%s406_s8] sm:$0xff]  ;;  %1098 = vmatprep.subr.mxu1 %v1405_v6  ;;  %v1634_v35 = vsub.s32 0, %v1628_v32  ;;  %v1644_v45 = vsub.s32 1, %v1628_v32  ;;  %v1651_v56 = vsub.s32 4, %v1628_v32  ;;  %s402_s4 = scalar_lea.vmem [#allocation8], %s1067_s18  ;;  %s898_s11 = scalar_lea.hbm %s1764_s7, %s1080_s3 }
  0x55   : > { %v422_v1 = vsel %vm421_vm0, %v420_v0, -inf  ;;  %v1603_v2 = vld [vmem:[%s410_s10] sm:$0xff]  ;;  %1216 = vpow2.f32 %v516_v11  ;;  %1099 = vmatpush3.msra.mxu1 %v521_v20  ;;  %v728_v33 = vrot.slane %v726_v31, 2  ;;  %v1678_v20 = vsub.s32 5, %v1628_v32  ;;  %s900_s13 = sshll.u32 %s402_s4, 4  ;;  %s886_s14 = scalar_lea.sflag [#allocation4], %s1578_s22  ;;  %s901_s13 = int_to_ptr.vmem [resolvable:$true] %s900_s13 }
  0x56   : > { %423 = vmax.xlane.f32.xlu0 %v422_v1  ;;  %v719_v5 = vmul.f32 0.5, %v1603_v2  ;;  %s1312_s10 = scalar_lea.vmem %s901_s13, 128 }
  0x57   : > { %v1631_v34 = vadd.f32 %v728_v33, %v1625_v29  ;;  %v1637_v36 = vsub.f32 %v1625_v29, %v728_v33  ;;  %p1313_p9 = scmp.ne.s32.totalorder %s901_s13, %s1312_s10 }
  0x59   : > { %v751_v38 = vrot.slane %v1631_v34, %v1634_v35  ;;  %v761_v39 = vrot.slane %v1637_v36, %v1634_v35  ;;  %v772_v49 = vrot.slane %v1631_v34, %v1644_v45  ;;  %v781_v50 = vrot.slane %v1637_v36, %v1644_v45  ;;  %p1314_p11 = pnand %p1313_p9, %p1551_p7 }
  0x5a   : > { %v818_v63 = vrot.slane %v1631_v34, %v1651_v56 }
  0x5b   : > { %p1315_p2 = pneg %p1314_p11 }
  0x62   : > { %v1217_v12 = vpop.eup %1216 }
  0x63   : > { %v518_v13 = vadd.f32 1.0, %v1217_v12 }
  0x65   : > { %1218 = vrcp.f32 %v518_v13 }
  0x6c   : > { %721 = vrot.lane.b32.xlu0 %v719_v5, %s1406_s9  ;;  %s1415_s9 = smov [#allocation8]  }
  0x72   : > { %v1219_v21 = vpop.eup %1218 }
  0x73   : > { %1101 = vmatmul.mubr.msk.f32.vlgmr.msra.gmra.mxu1 %vm523_vm4, %v1219_v21  ;;  %v1619_v27 = vsel %vm523_vm4, %v1219_v21, 0.0  ;;  %v847_v21 = vrot.slane %v1637_v36, %v1678_v20 }
  0xdf   : > { %v424_v14 = vpop.xlane.xlu0 %423 }
  0xe0   : > { %v425_v15 = vsub.f32 %v420_v0, %v424_v14  ;;  %v827_v0 = vrot.slane %v1637_v36, %v1651_v56  ;;  %v1411_v14 = vmov 6  }
  0xe2   : > { %v426_v16 = vmul.f32 1.442695, %v425_v15  ;;  %v1412_v15 = vmov 2  }
  0xe3   : > { %v722_v18 = vpop.permute.xlu0 %721 }
  0xe4   : > { %1220 = vpow2.f32 %v426_v16  ;;  %v725_v19 = vadd.f32 %v722_v18, %v1603_v2  ;;  %v724_v22 = vsub.f32 %v1603_v2, %v722_v18  ;;  %v1413_v16 = vmov 7  }
  0xe6   : > { %832 = vperm.xlu0 %1203, %v725_v19   ;;  %745 = vperm.xlu1 %1200, %v725_v19   ;;  %v732_v26 = vsub.f32 %v725_v19, %v724_v22 }
  0xea   : > { %755 = vperm.xlu1 %1200, %v724_v22   ;;  %1206 = vset.pattern.permute.xlu0 %v1408_v23 }
  0xee   : > { %1201 = vset.pattern.permute.xlu1 %v1409_v24 }
  0xef   : > { %766 = vperm.xlu1 %1201, %v725_v19  }
  0xf1   : > { %v1221_v25 = vpop.eup %1220 }
  0xf2   : > { %1094 = vmatmul.mubr.msk.f32.vlgmr.msra.gmra.mxu0 %vm421_vm0, %v1221_v25  ;;  %v428_v28 = vsel %vm421_vm0, %v1221_v25, 0.0 }
  0xf3   : > { %775 = vperm.xlu1 %1201, %v724_v22  }
  0xf7   : > { %1202 = vset.pattern.permute.xlu1 %v1408_v23 }
  0xf8   : > { %812 = vperm.xlu1 %1202, %v725_v19  }
  0xfc   : > { %821 = vperm.xlu1 %1202, %v724_v22  }
 0x100   : > { %734 = vrot.lane.b32.xlu1 %v732_v26, %s1410_s19  ;;  %s1316_s19 = sshll.u32 %s1415_s9, 4  ;;  %s1317_s19 = int_to_ptr.vmem [resolvable:$false] %s1316_s19 }
 0x101   : > { %1204 = vset.pattern.permute.xlu1 %v1403_v3  ;;  %s1318_s27 = scalar_lea.vmem %s1317_s19, 256  ;;  %p1319_p13 = scmp.lt.s32.totalorder %s901_s13, %s1317_s19 }
 0x102   : > { %p1320_p0 = scmp.lt.s32.totalorder %s1318_s27, %s1312_s10 }
 0x104   : > { %841 = vperm.xlu1 %1204, %v724_v22   ;;  %p1321_p5 = por %p1320_p0, %p1319_p13 }
 0x106   : > { %p1322_p10 = pnand %p1321_p5, %p1315_p2 }
 0x108   : > { %1205 = vset.pattern.permute.xlu1 %v1404_v4 }
 0x128   : > { %429 = vadd.xlane.f32.xlu1 %v428_v28 }
 0x161   : > { %v746_v37 = vpop.permute.xlu1 %745  ;;  %v833_v25 = vpop.permute.xlu0 %832 }
 0x162   : > { %v752_v41 = vmin.f32 %v746_v37, %v751_v38  ;;  %v797_v42 = vmax.f32 %v746_v37, %v751_v38 }
 0x165   : > { %v756_v40 = vpop.permute.xlu1 %755 }
 0x166   : > { %v762_v43 = vmax.f32 %v756_v40, %v761_v39  ;;  %v798_v44 = vmin.f32 %v756_v40, %v761_v39 }
 0x168   : > { %v763_v46 = vsub.f32 %v752_v41, %v762_v43  ;;  %v799_v47 = vsub.f32 %v797_v42, %v798_v44 }
 0x16a   : > { %v767_v48 = vpop.permute.xlu1 %766  ;;  %v764_v59 = vmax.f32 %v763_v46, 0.0 }
 0x16b   : > { %v773_v52 = vmin.f32 %v767_v48, %v772_v49  ;;  %v800_v53 = vmax.f32 %v767_v48, %v772_v49 }
 0x16e   : > { %v776_v51 = vpop.permute.xlu1 %775 }
 0x16f   : > { %v782_v54 = vmax.f32 %v776_v51, %v781_v50  ;;  %v801_v55 = vmin.f32 %v776_v51, %v781_v50 }
 0x171   : > { %v783_v57 = vsub.f32 %v773_v52, %v782_v54  ;;  %v802_v58 = vsub.f32 %v800_v53, %v801_v55 }
 0x173   : > { %v784_v60 = vmax.f32 %v783_v57, 0.0  ;;  %v803_v61 = vmul.f32 %v802_v58, %v799_v47  ;;  %v813_v62 = vpop.permute.xlu1 %812 }
 0x174   : > { %v819_v6 = vmin.f32 %v813_v62, %v818_v63  ;;  %v862_v7 = vmax.f32 %v813_v62, %v818_v63 }
 0x175   : > { %v1657_v1 = vmul.f32 %v784_v60, %v764_v59  ;;  %1222 = vrcp.f32 %v803_v61  ;;  %v419_v61 = vld [vmem:[%s1763_s6] sm:$0xff] }
 0x177   : > { %v822_v5 = vpop.permute.xlu1 %821 }
 0x178   : > { %v828_v8 = vmax.f32 %v822_v5, %v827_v0  ;;  %v863_v9 = vmin.f32 %v822_v5, %v827_v0 }
 0x17a   : > { %v829_v10 = vsub.f32 %v819_v6, %v828_v8  ;;  %v864_v11 = vsub.f32 %v862_v7, %v863_v9  ;;  %v879_v6 = vrot.slane %v419_v61, %v1651_v56 }
 0x17b   : > { %v735_v12 = vpop.permute.xlu1 %734 }
 0x17c   : > { %v737_v13 = vmul.f32 %v735_v12, %v732_v26  ;;  %v830_v43 = vmax.f32 %v829_v10, 0.0 }
 0x17e   : > { %853 = vperm.xlu0 %1206, %v737_v13   ;;  %788 = vperm.xlu1 %1205, %v737_v13  }
 0x17f   : > { %v842_v22 = vpop.permute.xlu1 %841 }
 0x180   : > { %v866_v26 = vmin.f32 %v842_v22, %v847_v21  ;;  %v848_v31 = vmax.f32 %v842_v22, %v847_v21  ;;  %v676_v22 = vrot.slane %v1625_v29, %v1651_v56 }
 0x182   : > { %1207 = vset.pattern.permute.xlu1 %v1408_v23  ;;  %1208 = vset.pattern.permute.xlu0 %v1403_v3  ;;  %v1414_v3 = vmov 3  }
 0x183   : > { %670 = vperm.xlu1 %1207, %v1603_v2  }
 0x187   : > { %1209 = vset.pattern.permute.xlu1 %v1404_v4  ;;  %v1671_v4 = vpop.f32.mrf.mxu1 }
 0x188   : > { %627 = vperm.xlu1 %1209, %v1603_v2  }
 0x189   : > { %v1102_v17 = vpop.f32.mrf.mxu1 }
 0x18a   : > { %v696_v17 = vsub.s32 6, %v1628_v32 }
 0x18c   : > { %1210 = vset.pattern.permute.xlu1 %v1409_v24  ;;  %v838_v24 = vrot.slane %v1631_v34, %v1678_v20 }
 0x18d   : > { %637 = vperm.xlu1 %1210, %v1603_v2  }
 0x18e   : > { %v839_v33 = vmin.f32 %v833_v25, %v838_v24 }
 0x190   : > { %v849_v37 = vsub.f32 %v839_v33, %v848_v31  ;;  %v618_v33 = vrot.slane %v419_v61, %v1644_v45 }
 0x191   : > { %1211 = vset.pattern.permute.xlu1 %v1411_v14 }
 0x192   : > { %691 = vperm.xlu1 %1211, %v1603_v2   ;;  %v850_v40 = vmax.f32 %v849_v37, 0.0 }
 0x194   : > { %v851_v47 = vmul.f32 %v850_v40, %v830_v43 }
 0x196   : > { %1212 = vset.pattern.permute.xlu1 %v1412_v15 }
 0x197   : > { %648 = vperm.xlu1 %1212, %v1603_v2  }
 0x19b   : > { %1213 = vset.pattern.permute.xlu1 %v1413_v16  ;;  %v633_v16 = vrot.slane %v1625_v29, %v1634_v35 }
 0x19c   : > { %702 = vperm.xlu1 %1213, %v1603_v2  }
 0x19d   : > { %602 = vadd.xlane.f32.xlu0 %v1619_v27  ;;  %v865_v27 = vmax.f32 %v833_v25, %v838_v24 }
 0x19f   : > { %v867_v28 = vsub.f32 %v865_v27, %v866_v26 }
 0x1a0   : > { %1214 = vset.pattern.permute.xlu1 %v1414_v3  ;;  %v643_v3 = vrot.slane %v1625_v29, %v1644_v45 }
 0x1a1   : > { %659 = vperm.xlu1 %1214, %v1603_v2   ;;  %v868_v30 = vmul.f32 %v867_v28, %v864_v11  ;;  %v707_v28 = vsub.s32 7, %v1628_v32 }
 0x1a3   : > { %1224 = vrcp.f32 %v868_v30  ;;  %v697_v30 = vrot.slane %v1625_v29, %v696_v17 }
 0x1b1   : > { %v430_v39 = vpop.xlane.xlu1 %429 }
 0x1b2   : > { %v1673_v18 = vpop.f32.mrf.mxu0 }
 0x1b3   : > { %680 = vperm.xlu0 %1208, %v1603_v2   ;;  %v738_v2 = vsub.f32 %v1631_v34, %v1637_v36  ;;  %v1223_v36 = vpop.eup %1222 }
 0x1b4   : > { %v1095_v19 = vpop.f32.mrf.mxu0  ;;  %v1225_v51 = vpop.eup %1224 }
 0x1b7   : > { %1215 = vset.pattern.permute.xlu0 %v1408_v23  ;;  %v740_v23 = vrot.slane %v738_v2, 1 }
 0x1b9   : > { %v742_v38 = vmul.f32 %v740_v23, %v738_v2  ;;  %v664_v2 = vsub.s32 3, %v1628_v32  ;;  %v613_v23 = vrot.slane %v419_v61, %v1634_v35 }
 0x1bb   : > { %v859_v41 = vrot.slane %v742_v38, %v1651_v56  ;;  %v794_v42 = vrot.slane %v742_v38, %v1634_v35  ;;  %v686_v56 = vrot.slane %v1625_v29, %v1678_v20 }
 0x1f9   : > { %v854_v44 = vpop.permute.xlu0 %853  ;;  %v789_v46 = vpop.permute.xlu1 %788 }
 0x1fa   : > { %v860_v48 = vadd.f32 %v859_v41, %v854_v44  ;;  %v795_v34 = vadd.f32 %v794_v42, %v789_v46  ;;  %v708_v41 = vrot.slane %v1625_v29, %v707_v28  ;;  %v665_v42 = vrot.slane %v1625_v29, %v664_v2 }
 0x1fb   : > { %v614_v46 = vmul.f32 %v613_v23, %v1671_v4 }
 0x1fc   : > { %v861_v49 = vsub.f32 %v860_v48, %v851_v47  ;;  %v796_v50 = vsub.f32 %v795_v34, %v1657_v1 }
 0x1fe   : > { %1226 = vrcp.f32 %v861_v49  ;;  %v872_v52 = vmul.f32 %v1225_v51, %v861_v49  ;;  %v807_v53 = vmul.f32 %v1223_v36, %v796_v50  ;;  %v671_v54 = vpop.permute.xlu1 %670 }
 0x1ff   : > { %1228 = vrcp.f32 %v796_v50  ;;  %v677_v37 = vsub.f32 %v671_v54, %v676_v22  ;;  %v715_v54 = vrot.slane %v419_v61, %v664_v2 }
 0x200   : > { %1230 = vrcp.f32 %v430_v39 }
 0x201   : > { %v678_v48 = vand.u32 2147483647, %v677_v37 }
 0x203   : > { %v628_v63 = vpop.permute.xlu1 %627 }
 0x204   : > { %v634_v24 = vsub.f32 %v628_v63, %v633_v16 }
 0x206   : > { %v635_v38 = vand.u32 2147483647, %v634_v24 }
 0x208   : > { %v638_v10 = vpop.permute.xlu1 %637 }
 0x209   : > { %v644_v25 = vsub.f32 %v638_v10, %v643_v3 }
 0x20b   : > { %v1227_v55 = vpop.eup %1226  ;;  %v645_v39 = vand.u32 2147483647, %v644_v25 }
 0x20c   : > { %v1229_v57 = vpop.eup %1228  ;;  %v870_v58 = vmul.f32 %v1227_v55, %v851_v47 }
 0x20d   : > { %v805_v59 = vmul.f32 %v1229_v57, %v1657_v1  ;;  %v692_v13 = vpop.permute.xlu1 %691  ;;  %v606_v1 = vsub.s32 2, %v1628_v32  ;;  %v646_v45 = vadd.f32 %v645_v39, %v635_v38  ;;  %v1231_v34 = vpop.eup %1230 }
 0x20e   : > { %v873_v60 = vadd.f32 %v872_v52, %v870_v58  ;;  %v698_v44 = vsub.f32 %v692_v13, %v697_v30 }
 0x20f   : > { %v808_v62 = vadd.f32 %v807_v53, %v805_v59  ;;  %v607_v15 = vrot.slane %v419_v61, %v606_v1  ;;  %v654_v27 = vrot.slane %v1625_v29, %v606_v1  ;;  %v512_v29 = vmul.f32 %v1231_v34, %v1673_v18 }
 0x210   : > { %v1078_v0 = vadd.f32 -1.0, %v873_v60  ;;  %v699_v51 = vand.u32 2147483647, %v698_v44 }
 0x211   : > { %v1077_v5 = vadd.f32 -1.0, %v808_v62  ;;  %v513_v62 = vmul.f32 -1.0, %v512_v29 }
 0x212   : > { %v875_v8 = vsub.f32 0.0, %v1078_v0  ;;  %v649_v14 = vpop.permute.xlu1 %648 }
 0x213   : > { %v810_v7 = vsub.f32 0.0, %v1077_v5  ;;  %v655_v40 = vsub.f32 %v649_v14, %v654_v27 }
 0x215   : > { %v880_v9 = vmul.f32 %v879_v6, %v810_v7  ;;  %v656_v36 = vand.u32 2147483647, %v655_v40 }
 0x217   : > { %v881_v11 = vadd.f32 %v880_v9, %v875_v8  ;;  %v703_v26 = vpop.permute.xlu1 %702  ;;  %v657_v55 = vadd.f32 %v656_v36, %v646_v45 }
 0x218   : > { %v709_v20 = vsub.f32 %v703_v26, %v708_v41 }
 0x219   : > { %v882_v12 = vmax.f32 %v810_v7, %v881_v11 }
 0x21a   : > { %v710_v57 = vand.u32 2147483647, %v709_v20 }
 0x21c   : > { %v660_v32 = vpop.permute.xlu1 %659 }
 0x21d   : > { %v666_v49 = vsub.f32 %v660_v32, %v665_v42 }
 0x226   : > { %v603_v19 = vpop.xlane.xlu0 %602 }
 0x227   : > { %v608_v21 = vsub.f32 %v607_v15, %v603_v19 }
 0x229   : > { %v609_v31 = vadd.f32 %v608_v21, %v1671_v4  ;;  %v667_v4 = vand.u32 2147483647, %v666_v49 }
 0x22b   : > { %v619_v47 = vmul.f32 %v618_v33, %v609_v31  ;;  %v668_v63 = vadd.f32 %v667_v4, %v657_v55 }
 0x22d   : > { %v620_v52 = vadd.f32 %v619_v47, %v614_v46 }
 0x22e   : > { %v681_v43 = vpop.permute.xlu0 %680 }
 0x22f   : > { %v687_v35 = vsub.f32 %v681_v43, %v686_v56  ;;  %v621_v59 = vmul.f32 -0.5, %v620_v52 }
 0x231   : > { %v688_v50 = vand.u32 2147483647, %v687_v35  ;;  %v622_v5 = vadd.f32 %v621_v59, %v513_v62 }
 0x233   : > { %v689_v53 = vadd.f32 %v688_v50, %v678_v48 }
 0x235   : > { %v700_v58 = vadd.f32 %v699_v51, %v689_v53 }
 0x237   : > { %v711_v60 = vadd.f32 %v710_v57, %v700_v58 }
 0x239   : > { %v716_v0 = vmul.f32 %v715_v54, %v711_v60 }
 0x23b   : > { %v717_v6 = vmax.f32 %v668_v63, %v716_v0 }
 0x23d   : > { %v718_v7 = vadd.f32 %v717_v6, %v622_v5 }
 0x23f   : > { %v883_v18 = vadd.f32 %v882_v12, %v718_v7 }
 0x241   : > { %884 = vst [vmem:[%s402_s4] sm:$0xff] %v883_v18 }
 0x242   : > { %1325 = shalt.err (!%p1322_p10)
}
 0x243   : > { %s1326_s18 = scalar_lea.hbm %s898_s11, 128  ;;  %s1330_s20 = scalar_lea.hbm %s1764_s7, 256 }
 0x244   : > { %p1327_p1 = scmp.ne.s32.totalorder %s898_s11, %s1326_s18  ;;  %p1331_p12 = scmp.lt.s32.totalorder %s898_s11, %s1764_s7 }
 0x245   : > { %p1332_p3 = scmp.lt.s32.totalorder %s1330_s20, %s1326_s18 }
 0x246   : > { %p1328_p4 = pnand %p1327_p1, %p1551_p7 }
 0x247   : > { %p1333_p8 = por %p1332_p3, %p1331_p12 }
 0x248   : > { %p1329_p6 = pneg %p1328_p4 }
 0x24a   : > { %p1334_p9 = pnand %p1333_p8, %p1329_p6 }
 0x24c   : > { %1337 = shalt.err (!%p1334_p9)
}
 0x24d   : > { %1113 = dma.vmem_to_hbm [thread:$0]  (%p1551_p7), %s901_s13, 128, %s898_s11, %s886_s14  }
 0x24e PF: > { %s912_s3 = sand.u32 1, %s1376_s24   ;;  %p1784_p11 = scmp.ne.s32.totalorder %s1774_s12, 0 }
 0x24f   : > { %p1785_p2 = scmp.ge.s32.totalorder %s1396_s29, 2  ;;  %s913_s4 = scalar_lea.sflag [#allocation4], %s912_s3 }
 0x251   : > { %p1127_p13 = pnand %p1785_p2, %p1784_p11 }
 0x253   : > { %p1128_p0 = pneg %p1127_p13 }
 0x255   : > { %1371 = dma.done.wait (%p1128_p0), %s913_s4, 128  }
 0x256   : > { %1373 = vsyncadd (%p1128_p0), %s913_s4, 4294967168  ;;  %s24_s29 = sadd.s32 1, %s1396_s29   ;;  %s1786_s16 = sld [smem:[#allocation12_spill]] }
 0x257   : > { %p21_p5 = scmp.ge.s32.totalorder %s24_s29, 4   ;;  %s1787_s24 = smov %s1380_s25 }
 0x258   : > { %s1788_s25 = smov %s1384_s26  ;;  %s1789_s26 = smov %s1560_s21 }
 0x259   : > { %s1790_s27 = smov %s1392_s28  ;;  %23 = sbr.rel (!%p21_p5) target bundleno = 10 (0xa), region = 115 }
 0x25c   : > { %s1791_s28 = smov %s1786_s16 }
 0x25e   :  { %918 = vsyncpa [#allocation3], 1 }
 0x25f   :  { %920 = vsyncpa [#allocation3 + $0x1], 1 }
 0x260   :  { %921 = vsyncpa [#allocation6], 1 }
 0x261   :  { %922 = vsyncpa [#allocation4], 1 }
 0x262   :  { %924 = vsyncpa [#allocation4 + $0x1], 1 }

</bundles_post_ra>
